<compile_context>
chip_gen: v5e
topology: v5e:2x2
jax: 0.10.0
libtpu: 0.0.40
codegen_flags: <defaults>
</compile_context>

<pallas_src>
import jax
import jax.numpy as jnp
from jax.experimental import pallas as pl
from jax.experimental.pallas import tpu as pltpu


# ----------------------------------------------------------------------------
# SE (squeeze-and-excitation) kernel: one batch element per grid step.
# ----------------------------------------------------------------------------
def _se_kernel(x_ref, w1_ref, b1_ref, w2_ref, b2_ref, o_ref):
    # x_ref / o_ref : (C, HWp)   (HWp is zero-padded to a multiple of 128)
    # w1_ref        : (hid, C)   pre-scaled by 1/HW (folds the mean into the matmul)
    # b1_ref        : (hid, 1)
    # w2_ref        : (C, hid)
    # b2_ref        : (C, 1)
    #
    # Squeeze: lane-axis sum -> (C, 1); C stays on sublanes, so no relayout is needed later.
    s_col = jnp.sum(x_ref[...].astype(jnp.float32), axis=1, keepdims=True)        # (C, 1)
    # Excite: keep the gate column-major the whole way.
    h = jnp.dot(w1_ref[...], s_col, preferred_element_type=jnp.float32) + b1_ref[...]   # (hid, 1)
    h = jnp.maximum(h, 0.0)
    g = jnp.dot(w2_ref[...], h, preferred_element_type=jnp.float32) + b2_ref[...]       # (C, 1)
    g = jax.nn.sigmoid(g)
    # Scale: broadcast the (C, 1) gate along lanes. Re-read x_ref (vld is cheap) instead of
    # holding the whole tile live across the MLP.
    o_ref[...] = (x_ref[...] * g.astype(x_ref.dtype)).astype(o_ref.dtype)


def se_block(x_nchw, w1, b1, w2, b2):
    """x_nchw: (B, C, H, W); w1: (hid, C); b1: (hid,); w2: (C, hid); b2: (C,)  (PyTorch layouts)."""
    B, C, H, W = x_nchw.shape
    HW = H * W
    hid = w1.shape[0]

    # Lane-dense spatial axis: pad HW up to a multiple of 128 (zeros don't change the folded sum).
    HWp = ((HW + 127) // 128) * 128
    x = x_nchw.reshape(B, C, HW)
    if HWp != HW:
        x = jnp.pad(x, ((0, 0), (0, 0), (0, HWp - HW)))

    w1s = (w1.astype(jnp.float32) / float(HW))      # fold 1/HW of the mean into layer 1
    b1c = b1.astype(jnp.float32).reshape(hid, 1)
    w2f = w2.astype(jnp.float32)
    b2c = b2.astype(jnp.float32).reshape(C, 1)

    # Explicit VMEM budget: in + out blocks, double-buffered, plus weights, plus headroom.
    itemsize = jnp.dtype(x.dtype).itemsize
    block_bytes = C * HWp * itemsize
    weight_bytes = (hid * C + hid + C * hid + C) * 4
    vmem_limit = int(4 * block_bytes * 1.25) + weight_bytes + (2 << 20)
    vmem_limit = min(max(vmem_limit, 8 << 20), 48 << 20)   # stay well inside v7x's 64 MiB

    out = pl.pallas_call(
        _se_kernel,
        out_shape=jax.ShapeDtypeStruct((B, C, HWp), x.dtype),
        grid_spec=pltpu.PrefetchScalarGridSpec(
            num_scalar_prefetch=0,
            grid=(B,),
            in_specs=[
                pl.BlockSpec((None, C, HWp), lambda b: (b, 0, 0)),   # x slab, lane-dense
                pl.BlockSpec((hid, C), lambda b: (0, 0)),            # W1 / HW
                pl.BlockSpec((hid, 1), lambda b: (0, 0)),            # b1 column
                pl.BlockSpec((C, hid), lambda b: (0, 0)),            # W2
                pl.BlockSpec((C, 1), lambda b: (0, 0)),              # b2 column
            ],
            out_specs=pl.BlockSpec((None, C, HWp), lambda b: (b, 0, 0)),
        ),
        compiler_params=pltpu.CompilerParams(
            dimension_semantics=("parallel",),
            vmem_limit_bytes=vmem_limit,
        ),
    )(x, w1s, b1c, w2f, b2c)

    return out[:, :, :HW].reshape(B, C, H, W)


# ----------------------------------------------------------------------------
# MLP head kernel: Dropout(identity) -> Flatten -> 784->392->32->128->10 with ReLU in between.
# Tiny weights (~1.3 MB) -> single grid step, everything resident in VMEM.
# ----------------------------------------------------------------------------
# TODO(synk): nn.Dropout is treated as identity (eval mode); training-mode stochastic dropout is
#             not implemented here.
def _mlp_kernel(x_ref, w1_ref, b1_ref, w2_ref, b2_ref, w3_ref, b3_ref, w4_ref, b4_ref, o_ref):
    h = x_ref[...].astype(jnp.float32)
    h = jnp.maximum(jnp.dot(h, w1_ref[...], preferred_element_type=jnp.float32) + b1_ref[...], 0.0)
    h = jnp.maximum(jnp.dot(h, w2_ref[...], preferred_element_type=jnp.float32) + b2_ref[...], 0.0)
    h = jnp.maximum(jnp.dot(h, w3_ref[...], preferred_element_type=jnp.float32) + b3_ref[...], 0.0)
    o_ref[...] = (jnp.dot(h, w4_ref[...], preferred_element_type=jnp.float32)
                  + b4_ref[...]).astype(o_ref.dtype)


def mlp_head(x_flat, lin_params):
    """x_flat: (B, 784); lin_params: tuple of (W (out,in), b (out,)) in PyTorch layout."""
    (w1, b1), (w2, b2), (w3, b3), (w4, b4) = lin_params
    B = x_flat.shape[0]
    args = [
        x_flat,
        w1.T.astype(jnp.float32), b1.astype(jnp.float32).reshape(1, -1),
        w2.T.astype(jnp.float32), b2.astype(jnp.float32).reshape(1, -1),
        w3.T.astype(jnp.float32), b3.astype(jnp.float32).reshape(1, -1),
        w4.T.astype(jnp.float32), b4.astype(jnp.float32).reshape(1, -1),
    ]
    return pl.pallas_call(
        _mlp_kernel,
        out_shape=jax.ShapeDtypeStruct((B, w4.shape[0]), x_flat.dtype),
        compiler_params=pltpu.CompilerParams(vmem_limit_bytes=32 << 20),
    )(*args)


# ----------------------------------------------------------------------------
# Full BRBSequentialVariable forward.
# ----------------------------------------------------------------------------
def brb_forward(x, se_params, lin_params):
    w1, b1, w2, b2 = se_params
    y = se_block(x, w1, b1, w2, b2)          # channel-gated feature map, same shape as x
    y_flat = y.reshape(x.shape[0], -1)       # Dropout (identity at eval) + Flatten
    return mlp_head(y_flat, lin_params)


# ----------------------------------------------------------------------------
# Pure-JAX reference.
# ----------------------------------------------------------------------------
def se_block_ref(x, w1, b1, w2, b2):
    s = jnp.mean(x, axis=(2, 3))                                  # (B, C)
    h = jnp.maximum(s @ w1.T + b1, 0.0)                           # (B, hid)
    g = jax.nn.sigmoid(h @ w2.T + b2)                             # (B, C)
    return x * g[:, :, None, None]


def brb_forward_ref(x, se_params, lin_params):
    w1, b1, w2, b2 = se_params
    y = se_block_ref(x, w1, b1, w2, b2)
    h = y.reshape(x.shape[0], -1)
    n = len(lin_params)
    for i, (w, b) in enumerate(lin_params):
        h = jnp.dot(h, w.T, precision=jax.lax.Precision.HIGHEST) + b
        if i < n - 1:
            h = jnp.maximum(h, 0.0)
    return h


if __name__ == "__main__":
    # C * H * W = 784 so the flattened SE output matches nn.Linear(784, 392) in the lin head.
    B, C, H, W = 2, 16, 7, 7
    sqfactor = 16
    hid = max(1, C // sqfactor)          # int(units / sqfactor)

    key = jax.random.PRNGKey(0)
    ks = jax.random.split(key, 10)
    x = jax.random.normal(ks[0], (B, C, H, W), dtype=jnp.float32)

    # SE parameters (PyTorch nn.Linear layout: weight (out, in), bias (out,)).
    w1 = jax.random.normal(ks[1], (hid, C), dtype=jnp.float32) * 0.1
    b1 = jax.random.normal(ks[2], (hid,), dtype=jnp.float32) * 0.1
    w2 = jax.random.normal(ks[3], (C, hid), dtype=jnp.float32) * 0.1
    b2 = jax.random.normal(ks[4], (C,), dtype=jnp.float32) * 0.1
    se_params = (w1, b1, w2, b2)

    # lin head: 784 -> 392 -> 32 -> 128 -> 10.
    dims = [(784, 392), (392, 32), (32, 128), (128, 10)]
    lin_params = []
    for i, (din, dout) in enumerate(dims):
        kw, kb = jax.random.split(ks[5 + i], 2)
        lin_params.append((
            jax.random.normal(kw, (dout, din), dtype=jnp.float32) * (din ** -0.5),
            jax.random.normal(kb, (dout,), dtype=jnp.float32) * 0.01,
        ))
    lin_params = tuple(lin_params)

    # Intermediate check: SE kernel vs reference.
    y_se = jax.block_until_ready(se_block(x, *se_params))
    y_se_ref = se_block_ref(x, *se_params)
    assert jnp.allclose(y_se, y_se_ref, atol=1e-5, rtol=1e-5), "SE block mismatch vs reference"

    # Full forward.
    out = jax.block_until_ready(brb_forward(x, se_params, lin_params))
    ref = brb_forward_ref(x, se_params, lin_params)
    assert out.shape == (B, 10)
    assert jnp.allclose(out, ref, atol=2e-4, rtol=2e-4), "full forward mismatch vs reference"

    print("KERNEL_OK")
</pallas_src>

<mosaic_0001>
module attributes {stable_mosaic.version = 11 : i64} {
  func.func @_se_kernel(%arg0: i32, %arg1: memref<1x16x128xf32, #tpu.memory_space<vmem>>, %arg2: memref<1x16xf32, #tpu.memory_space<vmem>>, %arg3: memref<1x1xf32, #tpu.memory_space<vmem>>, %arg4: memref<16x1xf32, #tpu.memory_space<vmem>>, %arg5: memref<16x1xf32, #tpu.memory_space<vmem>>, %arg6: memref<1x16x128xf32, #tpu.memory_space<vmem>>) attributes {dimension_semantics = [#tpu.dimension_semantics<parallel>], iteration_bounds = array<i64: 2>, scalar_prefetch = 0 : i64, scratch_operands = 0 : i64, tpu.core_type = #tpu.core_type<tc>, window_params = [{transform_indices = @transform_0, window_bounds = array<i64: 1, 16, 128>}, {pipeline_mode = #tpu.pipeline_mode<synchronous>, transform_indices = @transform_1, window_bounds = array<i64: 1, 16>}, {pipeline_mode = #tpu.pipeline_mode<synchronous>, transform_indices = @transform_2, window_bounds = array<i64: 1, 1>}, {pipeline_mode = #tpu.pipeline_mode<synchronous>, transform_indices = @transform_3, window_bounds = array<i64: 16, 1>}, {pipeline_mode = #tpu.pipeline_mode<synchronous>, transform_indices = @transform_4, window_bounds = array<i64: 16, 1>}, {transform_indices = @transform_5, window_bounds = array<i64: 1, 16, 128>}]} {
    %c0 = arith.constant 0 : index
    %c0_0 = arith.constant 0 : index
    %c0_1 = arith.constant 0 : index
    %0 = vector.load %arg1[%c0, %c0_0, %c0_1] : memref<1x16x128xf32, #tpu.memory_space<vmem>>, vector<1x16x128xf32>
    %1 = vector.shape_cast %0 : vector<1x16x128xf32> to vector<16x128xf32>
    %cst = arith.constant dense<0.000000e+00> : vector<16xf32>
    %2 = vector.multi_reduction <add>, %1, %cst [1] : vector<16x128xf32> to vector<16xf32>
    %3 = vector.shape_cast %2 : vector<16xf32> to vector<16x1xf32>
    %c0_2 = arith.constant 0 : index
    %c0_3 = arith.constant 0 : index
    %4 = vector.load %arg2[%c0_2, %c0_3] : memref<1x16xf32, #tpu.memory_space<vmem>>, vector<1x16xf32>
    %cst_4 = arith.constant dense<0.000000e+00> : vector<1x1xf32>
    %5 = tpu.matmul %4, %3, %cst_4 {dimension_numbers = #tpu.dot_dimension_numbers<[1], [0], [0], [1], [0, 0, 1, 1], [], []>} : vector<1x16xf32>, vector<16x1xf32>, vector<1x1xf32> -> vector<1x1xf32>
    %c0_5 = arith.constant 0 : index
    %c0_6 = arith.constant 0 : index
    %6 = vector.load %arg3[%c0_5, %c0_6] : memref<1x1xf32, #tpu.memory_space<vmem>>, vector<1x1xf32>
    %7 = arith.addf %5, %6 : vector<1x1xf32>
    %cst_7 = arith.constant 0.000000e+00 : f32
    %8 = vector.broadcast %cst_7 : f32 to vector<1x1xf32>
    %9 = arith.maximumf %7, %8 : vector<1x1xf32>
    %c0_8 = arith.constant 0 : index
    %c0_9 = arith.constant 0 : index
    %10 = vector.load %arg4[%c0_8, %c0_9] : memref<16x1xf32, #tpu.memory_space<vmem>>, vector<16x1xf32>
    %cst_10 = arith.constant dense<0.000000e+00> : vector<16x1xf32>
    %11 = tpu.matmul %10, %9, %cst_10 {dimension_numbers = #tpu.dot_dimension_numbers<[1], [0], [0], [1], [0, 0, 1, 1], [], []>} : vector<16x1xf32>, vector<1x1xf32>, vector<16x1xf32> -> vector<16x1xf32>
    %c0_11 = arith.constant 0 : index
    %c0_12 = arith.constant 0 : index
    %12 = vector.load %arg5[%c0_11, %c0_12] : memref<16x1xf32, #tpu.memory_space<vmem>>, vector<16x1xf32>
    %13 = arith.addf %11, %12 : vector<16x1xf32>
    %14 = arith.negf %13 : vector<16x1xf32>
    %15 = math.exp %14 : vector<16x1xf32>
    %cst_13 = arith.constant 1.000000e+00 : f32
    %16 = vector.broadcast %cst_13 : f32 to vector<16x1xf32>
    %17 = arith.addf %16, %15 : vector<16x1xf32>
    %18 = arith.divf %16, %17 : vector<16x1xf32>
    %c0_14 = arith.constant 0 : index
    %c0_15 = arith.constant 0 : index
    %c0_16 = arith.constant 0 : index
    %19 = vector.load %arg1[%c0_14, %c0_15, %c0_16] : memref<1x16x128xf32, #tpu.memory_space<vmem>>, vector<1x16x128xf32>
    %20 = vector.shape_cast %19 : vector<1x16x128xf32> to vector<16x128xf32>
    %21 = vector.broadcast %18 : vector<16x1xf32> to vector<16x128xf32>
    %22 = arith.mulf %20, %21 : vector<16x128xf32>
    %c0_17 = arith.constant 0 : index
    %c0_18 = arith.constant 0 : index
    %c0_19 = arith.constant 0 : index
    %23 = vector.load %arg6[%c0_17, %c0_18, %c0_19] : memref<1x16x128xf32, #tpu.memory_space<vmem>>, vector<1x16x128xf32>
    %24 = vector.shape_cast %23 : vector<1x16x128xf32> to vector<16x128xf32>
    %25 = vector.shape_cast %22 : vector<16x128xf32> to vector<1x16x128xf32>
    tpu.vector_store %arg6[%c0_17, %c0_18, %c0_19], %25 {strides = array<i32>} : memref<1x16x128xf32, #tpu.memory_space<vmem>>, vector<1x16x128xf32>,
    return
  }
  func.func @transform_0(%arg0: i32) -> (i32, i32, i32) {
    %c0_i32 = arith.constant 0 : i32
    %c0_i32_0 = arith.constant 0 : i32
    %c0_i32_1 = arith.constant 0 : i32
    return %arg0, %c0_i32, %c0_i32_0 : i32, i32, i32
  }
  func.func @transform_1(%arg0: i32) -> (i32, i32) {
    %c0_i32 = arith.constant 0 : i32
    %c0_i32_0 = arith.constant 0 : i32
    %c0_i32_1 = arith.constant 0 : i32
    return %c0_i32, %c0_i32_0 : i32, i32
  }
  func.func @transform_2(%arg0: i32) -> (i32, i32) {
    %c0_i32 = arith.constant 0 : i32
    %c0_i32_0 = arith.constant 0 : i32
    %c0_i32_1 = arith.constant 0 : i32
    return %c0_i32, %c0_i32_0 : i32, i32
  }
  func.func @transform_3(%arg0: i32) -> (i32, i32) {
    %c0_i32 = arith.constant 0 : i32
    %c0_i32_0 = arith.constant 0 : i32
    %c0_i32_1 = arith.constant 0 : i32
    return %c0_i32, %c0_i32_0 : i32, i32
  }
  func.func @transform_4(%arg0: i32) -> (i32, i32) {
    %c0_i32 = arith.constant 0 : i32
    %c0_i32_0 = arith.constant 0 : i32
    %c0_i32_1 = arith.constant 0 : i32
    return %c0_i32, %c0_i32_0 : i32, i32
  }
  func.func @transform_5(%arg0: i32) -> (i32, i32, i32) {
    %c0_i32 = arith.constant 0 : i32
    %c0_i32_0 = arith.constant 0 : i32
    %c0_i32_1 = arith.constant 0 : i32
    return %arg0, %c0_i32, %c0_i32_0 : i32, i32, i32
  }
}

</mosaic_0001>

<bundles_post_ra>
// kernel: tpu_custom_call.1
= control target key start
LH: loop header
LB: loop body
LE: loop exit
PB: predicated region body
PF: predicated region fallthrough
CT: control target
= control target key end

     0   :  { %s707_s0 = inlined_call_operand.vmem [shape: f32[2,16,128], index: 0, kind: input, shape index: {}]   ;;  %s708_s1 = inlined_call_operand.vmem [shape: f32[1,16], index: 1, kind: input, shape index: {}]   ;;  %s709_s2 = inlined_call_operand.<no memory space> [shape: f32[1,1], index: 2, kind: input, shape index: {}]   ;;  %s710_s3 = inlined_call_operand.vmem [shape: f32[16,1], index: 3, kind: input, shape index: {}]   ;;  %s711_s4 = inlined_call_operand.vmem [shape: f32[16,1], index: 4, kind: input, shape index: {}]   ;;  %s712_s5 = inlined_call_operand.hbm [shape: f32[2,16,128], index: 5, kind: output, shape index: {}]  }
   0x1   :  { %v10_v0 = vstv %s709_s2 }
   0x2   :  { %11 = vst [vmem:[#allocation2] sm:$0x1] %v10_v0 }
   0x3   :  { %12 = vsyncpa [#allocation4], 0 }
   0x4   :  { %14 = vsyncpa [#allocation4 + $0x1], 0  ;;  %s599_s20 = smov 0   ;;  %s601_s21 = smov 0  }
   0x5   :  { %s603_s22 = smov 0   ;;  %s605_s23 = smov 0  }
   0x6 LB: > { %s620_s2 = sadd.s32 4294967295, %s561_s23   ;;  %s426_s24 = sadd.s32 4294967294, %s561_s23   ;;  %s561_s23 = sphi %s605_s23, %s718_s23   ;;  %s557_s22 = sphi %s603_s22, %s717_s22   ;;  %s553_s21 = sphi %s601_s21, %s716_s21   ;;  %s549_s20 = sphi %s599_s20, %s715_s20  }
   0x7   : > { %s624_s25 = sadd.s32 1, %s561_s23   ;;  %s137_s26 = sadd.s32 1, %s557_s22 }
   0x8   : > { %s134_s27 = ssub.s32 %s561_s23, %s624_s25  ;;  %p147_p0 = scmp.ne.s32.totalorder %s557_s22, %s553_s21 }
   0x9   : > { %p135_p1 = scmp.eq.s32.totalorder %s134_s27, 0  ;;  %p148_p2 = scmp.eq.s32.totalorder %s620_s2, 1 }
   0xa   : > { %p153_p3 = scmp.ne.s32.totalorder %s553_s21, %s549_s20  ;;  %p154_p4 = scmp.eq.s32.totalorder %s426_s24, 1 }
   0xb   : > { %s635_s28 = scalar_select %p135_p1, %s557_s22, %s137_s26  }
   0xc   : > { %p637_p5 = por %p148_p2, %p147_p0  ;;  %p641_p6 = por %p154_p4, %p153_p3 }
   0xd   : > { %p429_p7 = scmp.ge.s32.totalorder %s561_s23, 1  ;;  %p192_p8 = scmp.lt.s32.totalorder %s561_s23, 3 }
   0xf   : > { %p193_p9 = pnand %p429_p7, %p192_p8 }
  0x10   : > { %p220_p10 = scmp.lt.s32.totalorder (!%p193_p9), %s620_s2, 1  ;;  %s217_s26 = sand.u32 (!%p193_p9), 1, %s553_s21  }
  0x11   : > { %196 = sbr.rel (%p193_p9) target bundleno = 568 (0x238), region = 40  ;;  %s430_s27 = sshll.u32 (!%p193_p9), %s217_s26, 4 }
  0x12   : > { %s349_s13 = scalar_lea.sflag (!%p193_p9), [#allocation4], %s217_s26  ;;  %s519_s17 = scalar_lea.hbm (!%p193_p9), %s712_s5, 32 }
  0x16   : > { %s221_s6 = scalar_select %p220_p10, %s620_s2, 1  ;;  %v231_v4 = vld [vmem:[%s708_s1] sm:$0x1]  ;;  %vm233_vm0 = vcmask 130048   ;;  %vm269_vm1 = vcmask 1040384   ;;  %vm262_vm2 = vcmask 7168  }
  0x17   : > { %v232_v6 = vld [vmem:[#allocation2] sm:$0x1]  ;;  %v259_v11 = vld [vmem:[%s710_s3 + $0x8] sm:$0xff]  ;;  %v563_v12 = vmov 0  }
  0x18   : > { %s444_s7 = sshll.u32 %s221_s6, 4  ;;  %v258_v10 = vld [vmem:[%s710_s3] sm:$0xff]  ;;  %489 = vset.pattern.permute.xlu1 %v563_v12  ;;  %490 = vset.pattern.permute.xlu0 %v563_v12  ;;  %v261_v17 = vld [vmem:[%s711_s4 + $0x8] sm:$0xff]  ;;  %s445_s6 = sshll.u32 %s620_s2, 4 }
  0x19   : > { %s224_s10 = scalar_lea.vmem %s707_s0, %s444_s7  ;;  %v260_v13 = vld [vmem:[%s711_s4] sm:$0xff]  ;;  %s360_s9 = scalar_lea.hbm %s712_s5, %s445_s6 }
  0x1a   : > { %v652_v1 = vld [vmem:[%s224_s10 + $0x8] sm:$0xff]  ;;  %v655_v2 = vld [vmem:[%s224_s10] sm:$0xff]  ;;  %s219_s10 = scalar_lea.vmem [#allocation3], %s430_s27  ;;  %s363_s12 = sshll.u32 %s360_s9, 4  ;;  %s364_s12 = int_to_ptr.hbm [resolvable:$true] %s363_s12 }
  0x1b   : > { %229 = vadd.xlane.f32.xlu0 %v652_v1  ;;  %s361_s11 = sshll.u32 %s219_s10, 4  ;;  %s513_s2 = sshra.s32 %s364_s12, 4  ;;  %s362_s11 = int_to_ptr.vmem [resolvable:$true] %s361_s11  ;;  %s514_s2 = int_to_ptr.hbm [resolvable:$true] %s513_s2 }
  0x1c   : > { %s515_s14 = scalar_lea.hbm %s514_s2, 16  ;;  %p520_p0 = scmp.lt.s32.totalorder %s514_s2, %s712_s5 }
  0x1d   : > { %p516_p11 = scmp.ne.s32.totalorder %s514_s2, %s515_s14  ;;  %p521_p1 = scmp.lt.s32.totalorder %s519_s17, %s515_s14 }
  0x1f   : > { %p517_p12 = pnand %p516_p11, %p637_p5  ;;  %p522_p2 = por %p521_p1, %p520_p0 }
  0x21   : > { %p518_p13 = pneg %p517_p12 }
  0x23   : > { %227 = vadd.xlane.f32.xlu0 %v655_v2  ;;  %p523_p3 = pnand %p522_p2, %p518_p13 }
  0x8e   : > { %v230_v3 = vpop.xlane.xlu0 %229 }
  0x8f   : > { %251 = vmatpush.msra.mxu0 %v230_v3 }
  0x96   : > { %v228_v5 = vpop.xlane.xlu0 %227 }
  0x97   : > { %252 = vmatpush.msra.mxu0 %v228_v5 }
  0x98   : > { %433 = vmatmul.msk.f32.vlgmr.msra.gmra.mxu0 %vm233_vm0, %v231_v4 }
 0x115   : > { %v254_v7 = vpop.f32.mrf.mxu0 }
 0x116   : > { %v255_v8 = vadd.f32 %v254_v7, %v232_v6 }
 0x118   : > { %v257_v9 = vmax.f32 %v255_v8, 0.0 }
 0x11a   : > { %434 = vmatpush.msk.msra.mxu1 %vm269_vm1, %v257_v9  ;;  %446 = vmatpush.msk.msra.mxu2 %vm269_vm1, %v257_v9 }
 0x11b   : > { %435 = vmatmul.msk.f32.vlgmr.msra.gmra.mxu1 %vm262_vm2, %v258_v10  ;;  %436 = vmatmul.msk.f32.vlgmr.msra.gmra.mxu2 %vm262_vm2, %v259_v11 }
 0x198   : > { %v290_v14 = vpop.f32.mrf.mxu1 }
 0x199   : > { %v291_v15 = vadd.f32 %v290_v14, %v260_v13 }
 0x19b   : > { %v437_v16 = vmul.f32 -1.442695, %v291_v15 }
 0x19d   : > { %491 = vpow2.f32 %v437_v16 }
 0x19e   : > { %v293_v18 = vpop.f32.mrf.mxu2 }
 0x19f   : > { %v294_v19 = vadd.f32 %v293_v18, %v261_v17 }
 0x1a1   : > { %v438_v20 = vmul.f32 -1.442695, %v294_v19 }
 0x1a3   : > { %v492_v21 = vpop.eup %491  ;;  %493 = vpow2.f32 %v438_v20 }
 0x1a4   : > { %v302_v22 = vadd.f32 1.0, %v492_v21 }
 0x1a6   : > { %495 = vrcp.f32 %v302_v22  ;;  %v315_v28 = vand.u32 2147483648, %v302_v22  ;;  %v313_v30 = vand.u32 2147483647, %v302_v22  ;;  %vm309_vm4 = vweird.f32 %v302_v22 }
 0x1a8   : > { %v316_v34 = vor.u32 1.1754944e-38, %v315_v28  ;;  %vm314_vm6 = vcmp.eq.f32.partialorder %v313_v30, 8.507059e+37 }
 0x1a9   : > { %v494_v23 = vpop.eup %493 }
 0x1aa   : > { %v303_v24 = vadd.f32 1.0, %v494_v23 }
 0x1ac   : > { %v496_v25 = vpop.eup %495  ;;  %497 = vrcp.f32 %v303_v24  ;;  %v330_v39 = vand.u32 2147483648, %v303_v24  ;;  %vm324_vm8 = vweird.f32 %v303_v24  ;;  %v328_v41 = vand.u32 2147483647, %v303_v24 }
 0x1ad   : > { %v305_v26 = vmul.f32 %v496_v25, %v302_v22  ;;  %vm310_vm3 = vweird.f32 %v496_v25 }
 0x1ae   : > { %vm311_vm5 = vmor %vm309_vm4, %vm310_vm3  ;;  %v331_v43 = vor.u32 1.1754944e-38, %v330_v39  ;;  %vm329_vm10 = vcmp.eq.f32.partialorder %v328_v41, 8.507059e+37 }
 0x1af   : > { %v306_v27 = vsub.f32 1.0, %v305_v26 }
 0x1b1   : > { %v307_v29 = vmul.f32 %v496_v25, %v306_v27 }
 0x1b2   : > { %v498_v31 = vpop.eup %497 }
 0x1b3   : > { %v308_v32 = vadd.f32 %v496_v25, %v307_v29  ;;  %v320_v33 = vmul.f32 %v498_v31, %v303_v24  ;;  %vm325_vm7 = vweird.f32 %v498_v31 }
 0x1b4   : > { %vm326_vm9 = vmor %vm324_vm8, %vm325_vm7 }
 0x1b5   : > { %v312_v35 = vsel %vm311_vm5, %v496_v25, %v308_v32  ;;  %v321_v36 = vsub.f32 1.0, %v320_v33 }
 0x1b6   : > { %v317_v37 = vsel %vm314_vm6, %v316_v34, %v312_v35 }
 0x1b7   : > { %336 = vperm.xlu1 %489, %v317_v37   ;;  %v322_v38 = vmul.f32 %v498_v31, %v321_v36 }
 0x1b9   : > { %v323_v40 = vadd.f32 %v498_v31, %v322_v38 }
 0x1bb   : > { %v327_v42 = vsel %vm326_vm9, %v498_v31, %v323_v40 }
 0x1bc   : > { %v332_v44 = vsel %vm329_vm10, %v331_v43, %v327_v42 }
 0x1bf   : > { %341 = vperm.xlu1 %489, %v332_v44  }
 0x229   : > { %v337_v45 = vpop.permute.xlu1 %336 }
 0x22a   : > { %v344_v46 = vmul.f32 %v337_v45, %v655_v2 }
 0x22c   : > { %346 = vst [vmem:[%s219_s10] sm:$0xff] %v344_v46 }
 0x231   : > { %v342_v47 = vpop.permute.xlu1 %341 }
 0x232   : > { %v345_v48 = vmul.f32 %v342_v47, %v652_v1 }
 0x234   : > { %347 = vst [vmem:[%s219_s10 + $0x8] sm:$0xff] %v345_v48 }
 0x235   : > { %526 = shalt.err (!%p523_p3)
}
 0x236   : > { %s564_s24 = smov 128   ;;  %s565_s26 = smov 8  }
 0x237   : > { %447 = dma.vmem_to_hbm [thread:$0]  (%p637_p5), %s362_s11, 256, %s364_s12, %s349_s13, %s564_s24, %s564_s24, %s565_s26  }
 0x238 PF: > { %p453_p4 = scmp.ge.s32.totalorder %s561_s23, 2  ;;  %s378_s27 = sand.u32 1, %s549_s20  }
 0x239   : > { %s379_s6 = scalar_lea.sflag [#allocation4], %s378_s27 }
 0x23a   : > { %p450_p7 = pnand %p453_p4, %p641_p6 }
 0x23c   : > { %p451_p8 = pneg %p450_p7 }
 0x23e   : > { %544 = dma.done.wait (%p451_p8), %s379_s6, 256  }
 0x23f   : > { %546 = vsyncadd (%p451_p8), %s379_s6, 4294967040  ;;  %p17_p9 = scmp.ge.s32.totalorder %s624_s25, 4   ;;  %s715_s20 = smov %s553_s21 }
 0x240   : > { %s716_s21 = smov %s557_s22  ;;  %s717_s22 = smov %s635_s28 }
 0x241   : > { %s718_s23 = smov %s624_s25  ;;  %19 = sbr.rel (!%p17_p9) target bundleno = 6 (0x6), region = 75 }
 0x246   :  { %385 = vsyncpa [#allocation4], 1 }
 0x247   :  { %387 = vsyncpa [#allocation4 + $0x1], 1 }

</bundles_post_ra>
